<compile_context>
chip_gen: v6e
topology: v6e:2x2x1
jax: 0.10.0
libtpu: 0.0.40
codegen_flags: <defaults>
</compile_context>

<pallas_src>
import math

import jax
import jax.numpy as jnp
from jax.experimental import pallas as pl
from jax.experimental.pallas import tpu as pltpu


def _drop_path_kernel(scale_ref, x_ref, o_ref):
    """One grid step: out = x * per_sample_scale.

    scale_ref : (tb, 1) float32, 0.0 (dropped) or 1/keep_prob (kept)
    x_ref     : (tb, tf) input block in VMEM
    o_ref     : (tb, tf) output block in VMEM
    """
    # Multiply in the input dtype (no f32 upcast of activations).
    o_ref[...] = x_ref[...] * scale_ref[...].astype(x_ref.dtype)


def _sublane_multiple(dtype) -> int:
    # Native second-minor tile for the dtype: 8 (4B), 16 (2B), 32 (1B).
    return {4: 8, 2: 16, 1: 32}.get(jnp.dtype(dtype).itemsize, 8)


def _choose_tiles(B: int, F: int, dtype):
    itemsize = jnp.dtype(dtype).itemsize
    sub = _sublane_multiple(dtype)
    # ~2 MiB per block -> <= ~8 MiB resident with double-buffered in+out:
    # comfortably under default scoped VMEM on v5e / v6e / v7x.
    target_block_bytes = 2 << 20

    # Feature tile: keep full width (lane-dense, unmasked stores) unless even
    # `sub` rows overflow the budget and F tiles cleanly in multiples of 128.
    tf = F
    if sub * F * itemsize > target_block_bytes and F % 128 == 0:
        tf = max(128, (target_block_bytes // (sub * itemsize)) // 128 * 128)
        tf = min(tf, F)

    # Row tile: sublane-aligned rows filling the budget (or the whole batch).
    row_bytes = max(tf * itemsize, 1)
    tb = max(sub, (target_block_bytes // row_bytes) // sub * sub)
    tb = min(tb, B)
    if B <= sub:
        tb = B

    # Memory-bound op: guarantee >= 4 grid steps for non-trivial tensors so
    # the pipeline overlaps DMA with compute and v7x's two TCs both get work.
    min_steps = 4 if B * F * itemsize > (1 << 20) else 1
    steps = lambda tb_, tf_: pl.cdiv(B, tb_) * pl.cdiv(F, tf_)
    while steps(tb, tf) < min_steps and tb > sub:
        tb = max(sub, (tb // 2) // sub * sub)
    while steps(tb, tf) < min_steps and F % 128 == 0 and tf % 256 == 0 and tf > 128:
        tf //= 2
    return tb, tf


def drop_path(x, drop_prob: float = 0.0, training: bool = False, *,
              key=None, seed: int = 0):
    """Pallas TPU DropPath. x: (B, ...). Returns array with same shape/dtype.

    Pass a distinct `key` (or `seed`) per call/layer/step to decorrelate masks.
    """
    if drop_prob == 0.0 or not training:
        return x  # identical fast path to the PyTorch module

    keep_prob = 1.0 - drop_prob
    B = x.shape[0]
    F = math.prod(x.shape[1:]) if x.ndim > 1 else 1
    x2 = x.reshape(B, F)

    # Per-sample Bernoulli(keep_prob) via floor(keep_prob + U[0,1)), folded
    # with the 1/keep_prob rescale into a single per-sample scale.
    if key is None:
        key = jax.random.PRNGKey(seed)
    u = jax.random.uniform(key, (B, 1), dtype=jnp.float32)
    keep = jnp.floor(jnp.float32(keep_prob) + u)           # 0.0 / 1.0 per sample
    scale = keep * jnp.float32(1.0 / keep_prob)             # 0 or 1/keep_prob

    tb, tf = _choose_tiles(B, F, x2.dtype)
    grid = (pl.cdiv(B, tb), pl.cdiv(F, tf))
    itemsize = jnp.dtype(x2.dtype).itemsize

    # TODO(synk): for very large activations, an HBM-resident (pl.ANY) input
    # with manual DMA could skip reading dropped samples entirely.
    out = pl.pallas_call(
        _drop_path_kernel,
        out_shape=jax.ShapeDtypeStruct((B, F), x2.dtype),
        grid=grid,
        in_specs=[
            pl.BlockSpec((tb, 1), lambda i, j: (i, 0)),     # per-sample scale
            pl.BlockSpec((tb, tf), lambda i, j: (i, j)),    # activations
        ],
        out_specs=pl.BlockSpec((tb, tf), lambda i, j: (i, j)),
        compiler_params=pltpu.CompilerParams(
            dimension_semantics=("parallel", "parallel")),
        cost_estimate=pl.CostEstimate(
            flops=B * F,
            transcendentals=0,
            bytes_accessed=2 * B * F * itemsize + B * 4),
    )(scale, x2)
    return out.reshape(x.shape)


if __name__ == "__main__":
    # Small shapes consistent with ViT usage of DropPath: (batch, tokens, dim).
    B, N, D = 2, 8, 32
    drop_prob = 0.5
    keep_prob = 1.0 - drop_prob

    x = jax.random.normal(jax.random.PRNGKey(0), (B, N, D), dtype=jnp.float32)

    # Training path (stochastic depth active) -> runs the Pallas kernel.
    out = drop_path(x, drop_prob=drop_prob, training=True, seed=0)
    out = jax.block_until_ready(out)

    assert out.shape == x.shape and out.dtype == x.dtype
    assert bool(jnp.all(jnp.isfinite(out)))

    # Per-sample semantics: each sample is either zeroed out entirely or scaled
    # by exactly 1/keep_prob (matches the PyTorch drop_path behaviour).
    for b in range(B):
        row = out[b]
        dropped = bool(jnp.all(row == 0.0))
        kept = bool(jnp.allclose(row, x[b] / keep_prob, rtol=1e-5, atol=1e-6))
        assert dropped or kept, "sample must be fully dropped or fully kept"

    # A slightly larger (still small) ViT-ish tensor to exercise multi-step
    # 2-D tiling (row blocks + 128-aligned feature blocks).
    xb = jax.random.normal(jax.random.PRNGKey(1), (8, 197, 384), dtype=jnp.float32)
    kp = 0.75
    outb = jax.block_until_ready(drop_path(xb, drop_prob=1.0 - kp, training=True, seed=3))
    assert outb.shape == xb.shape
    for b in range(xb.shape[0]):
        row = outb[b]
        dropped = bool(jnp.all(row == 0.0))
        kept = bool(jnp.allclose(row, xb[b] / kp, rtol=1e-5, atol=1e-5))
        assert dropped or kept, "sample must be fully dropped or fully kept"

    # Eval mode / zero drop-prob are identity (same fast path as PyTorch).
    assert bool(jnp.all(drop_path(x, drop_prob=drop_prob, training=False) == x))
    assert bool(jnp.all(drop_path(x, drop_prob=0.0, training=True) == x))

    print("KERNEL_OK")
</pallas_src>

<mosaic_0001>
module attributes {stable_mosaic.version = 11 : i64} {
  func.func @_drop_path_kernel(%arg0: i32, %arg1: i32, %arg2: memref<2x1xf32, #tpu.memory_space<vmem>>, %arg3: memref<2x256xf32, #tpu.memory_space<vmem>>, %arg4: memref<2x256xf32, #tpu.memory_space<vmem>>) attributes {dimension_semantics = [#tpu.dimension_semantics<parallel>, #tpu.dimension_semantics<parallel>], iteration_bounds = array<i64: 1, 1>, scalar_prefetch = 0 : i64, scratch_operands = 0 : i64, tpu.core_type = #tpu.core_type<tc>, window_params = [{transform_indices = @transform_0, window_bounds = array<i64: 2, 1>}, {transform_indices = @transform_1, window_bounds = array<i64: 2, 256>}, {transform_indices = @transform_2, window_bounds = array<i64: 2, 256>}]} {
    %c0 = arith.constant 0 : index
    %c0_0 = arith.constant 0 : index
    %0 = vector.load %arg3[%c0, %c0_0] : memref<2x256xf32, #tpu.memory_space<vmem>>, vector<2x256xf32>
    %c0_1 = arith.constant 0 : index
    %c0_2 = arith.constant 0 : index
    %1 = vector.load %arg2[%c0_1, %c0_2] : memref<2x1xf32, #tpu.memory_space<vmem>>, vector<2x1xf32>
    %2 = vector.broadcast %1 : vector<2x1xf32> to vector<2x256xf32>
    %3 = arith.mulf %0, %2 : vector<2x256xf32>
    %c0_3 = arith.constant 0 : index
    %c0_4 = arith.constant 0 : index
    %4 = vector.load %arg4[%c0_3, %c0_4] : memref<2x256xf32, #tpu.memory_space<vmem>>, vector<2x256xf32>
    tpu.vector_store %arg4[%c0_3, %c0_4], %3 {strides = array<i32>} : memref<2x256xf32, #tpu.memory_space<vmem>>, vector<2x256xf32>,
    return
  }
  func.func @transform_0(%arg0: i32, %arg1: i32) -> (i32, i32) {
    %c0_i32 = arith.constant 0 : i32
    %c0_i32_0 = arith.constant 0 : i32
    return %arg0, %c0_i32 : i32, i32
  }
  func.func @transform_1(%arg0: i32, %arg1: i32) -> (i32, i32) {
    %c0_i32 = arith.constant 0 : i32
    return %arg0, %arg1 : i32, i32
  }
  func.func @transform_2(%arg0: i32, %arg1: i32) -> (i32, i32) {
    %c0_i32 = arith.constant 0 : i32
    return %arg0, %arg1 : i32, i32
  }
}

</mosaic_0001>

<bundles_post_ra>
// kernel: tpu_custom_call.1
= control target key start
LH: loop header
LB: loop body
LE: loop exit
PB: predicated region body
PF: predicated region fallthrough
CT: control target
= control target key end

     0   :  { %v68_v1 = vmov 0   ;;  %s95_s0 = inlined_call_operand.vmem [shape: f32[2,1], index: 0, kind: input, shape index: {}]   ;;  %s96_s1 = inlined_call_operand.vmem [shape: f32[2,256], index: 1, kind: input, shape index: {}]   ;;  %s97_s2 = inlined_call_operand.hbm [shape: f32[2,256], index: 2, kind: output, shape index: {}]  }
   0x1   :  { %v13_v0 = vld [vmem:[%s95_s0] sm:$0x3]  ;;  %45 = vset.pattern.permute.xlu0 %v68_v1 }
   0x2   :  { %7 = vsyncpa [#allocation3], 0  ;;  %16 = vperm.xlu0 %45, %v13_v0   ;;  %v69_v2 = vmov 269488144   ;;  %v21_v4 = vlaneseq  ;;  %v12_v9 = vld [vmem:[%s96_s1] sm:$0xf] }
   0x3   :  { %v19_v3 = vunpack.c.l.s4 %v69_v2  ;;  %s70_s13 = smov [#allocation2]  }
   0x4   :  { %v22_v6 = vshrl.u32 %v21_v4, 7  ;;  %s34_s14 = sshll.u32 %s70_s13, 4  ;;  %s35_s14 = int_to_ptr.vmem [resolvable:$true] %s34_s14 }
   0x5   :  { %v20_v5 = vunpack.c.0.s8 %v19_v3  ;;  %s46_s0 = scalar_lea.vmem %s35_s14, 64  ;;  %p51_p1 = scmp.lt.s32.totalorder %s35_s14, %s35_s14 }
   0x6   :  { %p47_p0 = scmp.ne.s32.totalorder %s35_s14, %s46_s0  ;;  %p52_p2 = scmp.lt.s32.totalorder %s46_s0, %s46_s0 }
   0x7   :  { %v23_v7 = vsub.s32 %v20_v5, %v22_v6 }
   0x8   :  { %p53_p3 = por %p52_p2, %p51_p1 }
   0xa   :  { %p54_p4 = pnand %p53_p3, %p47_p0 }
  0x7d   :  { %v17_v8 = vpop.permute.xlu0 %16 }
  0x7e   :  { %v24_v10 = vrot.slane %v17_v8, %v23_v7 }
  0x80   :  { %v26_v11 = vmul.f32 %v24_v10, %v12_v9 }
  0x82   :  { %27 = vst [vmem:[#allocation2] sm:$0xf] %v26_v11 }
  0x83   :  { %57 = shalt.err (!%p54_p4)
}
  0x84   :  { %37 = dma.vmem_to_hbm [thread:$0]  %s35_s14, 64, %s97_s2, [#allocation3]  }
  0x85   :  { %66 = dma.done.wait [#allocation3], 64  }
  0x86   :  { %67 = vsyncadd [#allocation3], 4294967232 }
  0x87   :  { %41 = vsyncpa [#allocation3], 1 }

</bundles_post_ra>
